<compile_context>
chip_gen: v6e
topology: v6e:2x2x1
jax: 0.10.0
libtpu: 0.0.40
codegen_flags: <defaults>
</compile_context>

<pallas_src>
import jax
import jax.numpy as jnp
from jax.experimental import pallas as pl
from jax.experimental.pallas import tpu as pltpu

_LANE = 128
# Per-TC VMEM data budget for the pipelined batch tiles (conservative: leaves
# headroom for compiler scratch inside v7x's 64 MiB physical VMEM).
_VMEM_DATA_BUDGET = 36 * 1024 * 1024
_VMEM_LIMIT_BYTES = 48 * 1024 * 1024


def _mlp_kernel(x_ref,
                w1_ref, b1_ref,
                w2_ref, b2_ref,
                w3_ref, b3_ref,
                w4_ref, b4_ref,
                o_ref):
    """Fused linear1->relu -> linear2->relu -> linear3->relu -> linear4 for one
    batch tile.  All dropouts are identity in eval mode (and the reference's
    dropout on the pre-relu h2 is dead code), so they are omitted."""

    def layer(h, w_ref, b_ref, relu):
        # bf16 weights => cast activations too so the MXU actually runs the bf16
        # path; accumulate in f32; bias-add / ReLU stay in f32 (no bf16 VPU on v5e).
        a = h if h.dtype == w_ref.dtype else h.astype(w_ref.dtype)
        y = jnp.dot(a, w_ref[...], preferred_element_type=jnp.float32)
        y = y + b_ref[...].astype(jnp.float32)
        return jnp.maximum(y, 0.0) if relu else y

    h = x_ref[...]
    h = layer(h, w1_ref, b1_ref, True)
    h = layer(h, w2_ref, b2_ref, True)
    h = layer(h, w3_ref, b3_ref, True)
    y = layer(h, w4_ref, b4_ref, False)
    o_ref[...] = y.astype(o_ref.dtype)


def prepare_params(params, *, weight_dtype=None):
    """One-time parameter prep (call once, NOT per forward):
      * optional cast to weight_dtype (jnp.bfloat16 on v6e/v7x for ~2x MXU
        throughput and half the weight DMA bytes; default f32 matches PyTorch),
      * lane-pad w4/b4 so the output store is an unmasked full-width vst.
    """
    if weight_dtype is not None:
        params = {k: v.astype(weight_dtype) for k, v in params.items()}
    Hid, Out = params["w4"].shape
    p_dtype = params["w4"].dtype
    out_pad = max(_LANE, ((Out + _LANE - 1) // _LANE) * _LANE)

    prepped = {k: params[k] for k in ("w1", "b1", "w2", "b2", "w3", "b3")}
    prepped["w4p"] = jnp.zeros((Hid, out_pad), p_dtype).at[:, :Out].set(params["w4"])
    prepped["b4p"] = jnp.zeros((1, out_pad), p_dtype).at[:, :Out].set(params["b4"])
    prepped["out_dim"] = Out
    prepped["out_pad"] = out_pad
    return prepped


def _choose_tile_m(B, In, Hid, out_pad, weight_bytes):
    # Bytes of VMEM per batch row: double-buffered x + padded-output f32 tiles,
    # plus a rough bound for the fused f32 intermediates.
    per_row = 4 * 2 * (In + out_pad) + 4 * 4 * Hid
    max_rows = (_VMEM_DATA_BUDGET - weight_bytes) // per_row
    max_rows = max(8, (max_rows // 8) * 8)
    if B <= max_rows:
        return B          # single grid step: zero per-step pipeline overhead
    return max_rows       # large, 8-aligned tiles for big B (batch padded below)


def learn_kappa_layers3_forward(x, prepped, *, tile_m=None):
    """Fused forward of learnKappa_layers3.

    x: (B, In) float32.
    prepped: output of prepare_params().
    """
    B, In = x.shape
    Hid = prepped["w1"].shape[1]
    Out = prepped["out_dim"]
    out_pad = prepped["out_pad"]
    p_itemsize = jnp.dtype(prepped["w1"].dtype).itemsize

    # Weights/biases are single-buffered (see repl() below), so count them once.
    weight_bytes = p_itemsize * (
        In * Hid + Hid + 2 * (Hid * Hid + Hid) + Hid * out_pad + out_pad)

    if tile_m is None:
        tile_m = _choose_tile_m(B, In, Hid, out_pad, weight_bytes)
    assert tile_m % 8 == 0 or tile_m == B, "tile_m must be 8-aligned (or == B)"

    grid_m = pl.cdiv(B, tile_m)
    B_pad = grid_m * tile_m
    if B_pad != B:
        # Pad batch rows so every tile is full (cheap XLA pad outside the kernel).
        x = jnp.zeros((B_pad, In), x.dtype).at[:B, :].set(x)

    def repl(shape):
        # Whole array, constant block index, single-buffered -> DMA'd into VMEM
        # once and kept resident across all grid steps.
        return pl.BlockSpec(shape, lambda i: (0,) * len(shape),
                            pipeline_mode=pl.Buffered(1))

    in_specs = [
        pl.BlockSpec((tile_m, In), lambda i: (i, 0)),     # x tile
        repl((In, Hid)),      repl((1, Hid)),             # layer 1
        repl((Hid, Hid)),     repl((1, Hid)),             # layer 2
        repl((Hid, Hid)),     repl((1, Hid)),             # layer 3
        repl((Hid, out_pad)), repl((1, out_pad)),         # layer 4 (lane-padded)
    ]
    out_specs = pl.BlockSpec((tile_m, out_pad), lambda i: (i, 0))

    y_pad = pl.pallas_call(
        _mlp_kernel,
        out_shape=jax.ShapeDtypeStruct((B_pad, out_pad), jnp.float32),
        grid_spec=pl.GridSpec(grid=(grid_m,), in_specs=in_specs,
                              out_specs=out_specs),
        compiler_params=pltpu.CompilerParams(
            dimension_semantics=("parallel",),
            vmem_limit_bytes=_VMEM_LIMIT_BYTES,
        ),
    )(x,
      prepped["w1"], prepped["b1"],
      prepped["w2"], prepped["b2"],
      prepped["w3"], prepped["b3"],
      prepped["w4p"], prepped["b4p"])

    # TODO(synk): at very large B (esp. v5e) the f32 (B, 128)-padded writeback is the
    #             dominant HBM stream; emit the output lane-dense as (Out, B) or store
    #             the padded slab in bf16 to cut output HBM traffic up to ~16x.
    return y_pad[:B, :Out]


def init_params(key, in_nodes, hid, out_nodes):
    """Deterministic init mimicking nn.Linear (uniform in +/- 1/sqrt(fan_in)).
    Weights stored transposed as (in, out); biases as (1, out)."""
    dims = [(in_nodes, hid), (hid, hid), (hid, hid), (hid, out_nodes)]
    params = {}
    keys = jax.random.split(key, 2 * len(dims))
    for idx, (fan_in, fan_out) in enumerate(dims):
        bound = 1.0 / jnp.sqrt(float(fan_in))
        w = jax.random.uniform(keys[2 * idx], (fan_in, fan_out),
                               minval=-bound, maxval=bound, dtype=jnp.float32)
        b = jax.random.uniform(keys[2 * idx + 1], (1, fan_out),
                               minval=-bound, maxval=bound, dtype=jnp.float32)
        params[f"w{idx + 1}"] = w
        params[f"b{idx + 1}"] = b
    return params


def reference_forward(x, params):
    # Matches learnKappa_layers3.forward with Dropout(0.25) in eval mode (identity).
    h1 = jnp.maximum(x @ params["w1"] + params["b1"], 0.0)
    h3 = jnp.maximum(h1 @ params["w2"] + params["b2"], 0.0)
    h5 = jnp.maximum(h3 @ params["w3"] + params["b3"], 0.0)
    return h5 @ params["w4"] + params["b4"]


if __name__ == "__main__":
    In_nodes, Hid, Out_nodes = 16, 32, 8
    B = 64

    key = jax.random.PRNGKey(0)
    k_x, k_p = jax.random.split(key)
    x = jax.random.normal(k_x, (B, In_nodes), dtype=jnp.float32)
    params = init_params(k_p, In_nodes, Hid, Out_nodes)

    prepped = prepare_params(params)                 # one-time pad/cast, f32 default
    y = learn_kappa_layers3_forward(x, prepped)      # tile_m=B=64 -> grid=(1,)
    y = jax.block_until_ready(y)

    y_ref = reference_forward(x, params)
    assert y.shape == (B, Out_nodes)
    assert jnp.allclose(y, y_ref, atol=1e-5, rtol=1e-5)

    print("KERNEL_OK")
</pallas_src>

<mosaic_0001>
module attributes {stable_mosaic.version = 11 : i64} {
  func.func @_mlp_kernel(%arg0: i32, %arg1: memref<64x16xf32, #tpu.memory_space<vmem>>, %arg2: memref<16x32xf32, #tpu.memory_space<vmem>>, %arg3: memref<1x32xf32, #tpu.memory_space<vmem>>, %arg4: memref<32x32xf32, #tpu.memory_space<vmem>>, %arg5: memref<1x32xf32, #tpu.memory_space<vmem>>, %arg6: memref<32x32xf32, #tpu.memory_space<vmem>>, %arg7: memref<1x32xf32, #tpu.memory_space<vmem>>, %arg8: memref<32x128xf32, #tpu.memory_space<vmem>>, %arg9: memref<1x128xf32, #tpu.memory_space<vmem>>, %arg10: memref<64x128xf32, #tpu.memory_space<vmem>>) attributes {dimension_semantics = [#tpu.dimension_semantics<parallel>], iteration_bounds = array<i64: 1>, scalar_prefetch = 0 : i64, scratch_operands = 0 : i64, tpu.core_type = #tpu.core_type<tc>, window_params = [{transform_indices = @transform_0, window_bounds = array<i64: 64, 16>}, {pipeline_mode = #tpu.pipeline_mode<synchronous>, transform_indices = @transform_1, window_bounds = array<i64: 16, 32>}, {pipeline_mode = #tpu.pipeline_mode<synchronous>, transform_indices = @transform_2, window_bounds = array<i64: 1, 32>}, {pipeline_mode = #tpu.pipeline_mode<synchronous>, transform_indices = @transform_3, window_bounds = array<i64: 32, 32>}, {pipeline_mode = #tpu.pipeline_mode<synchronous>, transform_indices = @transform_4, window_bounds = array<i64: 1, 32>}, {pipeline_mode = #tpu.pipeline_mode<synchronous>, transform_indices = @transform_5, window_bounds = array<i64: 32, 32>}, {pipeline_mode = #tpu.pipeline_mode<synchronous>, transform_indices = @transform_6, window_bounds = array<i64: 1, 32>}, {pipeline_mode = #tpu.pipeline_mode<synchronous>, transform_indices = @transform_7, window_bounds = array<i64: 32, 128>}, {pipeline_mode = #tpu.pipeline_mode<synchronous>, transform_indices = @transform_8, window_bounds = array<i64: 1, 128>}, {transform_indices = @transform_9, window_bounds = array<i64: 64, 128>}]} {
    %c0 = arith.constant 0 : index
    %c0_0 = arith.constant 0 : index
    %0 = vector.load %arg1[%c0, %c0_0] : memref<64x16xf32, #tpu.memory_space<vmem>>, vector<64x16xf32>
    %c0_1 = arith.constant 0 : index
    %c0_2 = arith.constant 0 : index
    %1 = vector.load %arg2[%c0_1, %c0_2] : memref<16x32xf32, #tpu.memory_space<vmem>>, vector<16x32xf32>
    %cst = arith.constant dense<0.000000e+00> : vector<64x32xf32>
    %2 = tpu.matmul %0, %1, %cst {dimension_numbers = #tpu.dot_dimension_numbers<[1], [0], [0], [1], [0, 0, 1, 1], [], []>} : vector<64x16xf32>, vector<16x32xf32>, vector<64x32xf32> -> vector<64x32xf32>
    %c0_3 = arith.constant 0 : index
    %c0_4 = arith.constant 0 : index
    %3 = vector.load %arg3[%c0_3, %c0_4] : memref<1x32xf32, #tpu.memory_space<vmem>>, vector<1x32xf32>
    %4 = vector.broadcast %3 : vector<1x32xf32> to vector<64x32xf32>
    %5 = arith.addf %2, %4 : vector<64x32xf32>
    %cst_5 = arith.constant 0.000000e+00 : f32
    %6 = vector.broadcast %cst_5 : f32 to vector<64x32xf32>
    %7 = arith.maximumf %5, %6 : vector<64x32xf32>
    %c0_6 = arith.constant 0 : index
    %c0_7 = arith.constant 0 : index
    %8 = vector.load %arg4[%c0_6, %c0_7] : memref<32x32xf32, #tpu.memory_space<vmem>>, vector<32x32xf32>
    %cst_8 = arith.constant dense<0.000000e+00> : vector<64x32xf32>
    %9 = tpu.matmul %7, %8, %cst_8 {dimension_numbers = #tpu.dot_dimension_numbers<[1], [0], [0], [1], [0, 0, 1, 1], [], []>} : vector<64x32xf32>, vector<32x32xf32>, vector<64x32xf32> -> vector<64x32xf32>
    %c0_9 = arith.constant 0 : index
    %c0_10 = arith.constant 0 : index
    %10 = vector.load %arg5[%c0_9, %c0_10] : memref<1x32xf32, #tpu.memory_space<vmem>>, vector<1x32xf32>
    %11 = vector.broadcast %10 : vector<1x32xf32> to vector<64x32xf32>
    %12 = arith.addf %9, %11 : vector<64x32xf32>
    %cst_11 = arith.constant 0.000000e+00 : f32
    %13 = vector.broadcast %cst_11 : f32 to vector<64x32xf32>
    %14 = arith.maximumf %12, %13 : vector<64x32xf32>
    %c0_12 = arith.constant 0 : index
    %c0_13 = arith.constant 0 : index
    %15 = vector.load %arg6[%c0_12, %c0_13] : memref<32x32xf32, #tpu.memory_space<vmem>>, vector<32x32xf32>
    %cst_14 = arith.constant dense<0.000000e+00> : vector<64x32xf32>
    %16 = tpu.matmul %14, %15, %cst_14 {dimension_numbers = #tpu.dot_dimension_numbers<[1], [0], [0], [1], [0, 0, 1, 1], [], []>} : vector<64x32xf32>, vector<32x32xf32>, vector<64x32xf32> -> vector<64x32xf32>
    %c0_15 = arith.constant 0 : index
    %c0_16 = arith.constant 0 : index
    %17 = vector.load %arg7[%c0_15, %c0_16] : memref<1x32xf32, #tpu.memory_space<vmem>>, vector<1x32xf32>
    %18 = vector.broadcast %17 : vector<1x32xf32> to vector<64x32xf32>
    %19 = arith.addf %16, %18 : vector<64x32xf32>
    %cst_17 = arith.constant 0.000000e+00 : f32
    %20 = vector.broadcast %cst_17 : f32 to vector<64x32xf32>
    %21 = arith.maximumf %19, %20 : vector<64x32xf32>
    %c0_18 = arith.constant 0 : index
    %c0_19 = arith.constant 0 : index
    %22 = vector.load %arg8[%c0_18, %c0_19] : memref<32x128xf32, #tpu.memory_space<vmem>>, vector<32x128xf32>
    %cst_20 = arith.constant dense<0.000000e+00> : vector<64x128xf32>
    %23 = tpu.matmul %21, %22, %cst_20 {dimension_numbers = #tpu.dot_dimension_numbers<[1], [0], [0], [1], [0, 0, 1, 1], [], []>} : vector<64x32xf32>, vector<32x128xf32>, vector<64x128xf32> -> vector<64x128xf32>
    %c0_21 = arith.constant 0 : index
    %c0_22 = arith.constant 0 : index
    %24 = vector.load %arg9[%c0_21, %c0_22] : memref<1x128xf32, #tpu.memory_space<vmem>>, vector<1x128xf32>
    %25 = vector.broadcast %24 : vector<1x128xf32> to vector<64x128xf32>
    %26 = arith.addf %23, %25 : vector<64x128xf32>
    %c0_23 = arith.constant 0 : index
    %c0_24 = arith.constant 0 : index
    %27 = vector.load %arg10[%c0_23, %c0_24] : memref<64x128xf32, #tpu.memory_space<vmem>>, vector<64x128xf32>
    tpu.vector_store %arg10[%c0_23, %c0_24], %26 {strides = array<i32>} : memref<64x128xf32, #tpu.memory_space<vmem>>, vector<64x128xf32>,
    return
  }
  func.func @transform_0(%arg0: i32) -> (i32, i32) {
    %c0_i32 = arith.constant 0 : i32
    %c0_i32_0 = arith.constant 0 : i32
    return %arg0, %c0_i32 : i32, i32
  }
  func.func @transform_1(%arg0: i32) -> (i32, i32) {
    %c0_i32 = arith.constant 0 : i32
    %c0_i32_0 = arith.constant 0 : i32
    %c0_i32_1 = arith.constant 0 : i32
    return %c0_i32, %c0_i32_0 : i32, i32
  }
  func.func @transform_2(%arg0: i32) -> (i32, i32) {
    %c0_i32 = arith.constant 0 : i32
    %c0_i32_0 = arith.constant 0 : i32
    %c0_i32_1 = arith.constant 0 : i32
    return %c0_i32, %c0_i32_0 : i32, i32
  }
  func.func @transform_3(%arg0: i32) -> (i32, i32) {
    %c0_i32 = arith.constant 0 : i32
    %c0_i32_0 = arith.constant 0 : i32
    %c0_i32_1 = arith.constant 0 : i32
    return %c0_i32, %c0_i32_0 : i32, i32
  }
  func.func @transform_4(%arg0: i32) -> (i32, i32) {
    %c0_i32 = arith.constant 0 : i32
    %c0_i32_0 = arith.constant 0 : i32
    %c0_i32_1 = arith.constant 0 : i32
    return %c0_i32, %c0_i32_0 : i32, i32
  }
  func.func @transform_5(%arg0: i32) -> (i32, i32) {
    %c0_i32 = arith.constant 0 : i32
    %c0_i32_0 = arith.constant 0 : i32
    %c0_i32_1 = arith.constant 0 : i32
    return %c0_i32, %c0_i32_0 : i32, i32
  }
  func.func @transform_6(%arg0: i32) -> (i32, i32) {
    %c0_i32 = arith.constant 0 : i32
    %c0_i32_0 = arith.constant 0 : i32
    %c0_i32_1 = arith.constant 0 : i32
    return %c0_i32, %c0_i32_0 : i32, i32
  }
  func.func @transform_7(%arg0: i32) -> (i32, i32) {
    %c0_i32 = arith.constant 0 : i32
    %c0_i32_0 = arith.constant 0 : i32
    %c0_i32_1 = arith.constant 0 : i32
    return %c0_i32, %c0_i32_0 : i32, i32
  }
  func.func @transform_8(%arg0: i32) -> (i32, i32) {
    %c0_i32 = arith.constant 0 : i32
    %c0_i32_0 = arith.constant 0 : i32
    %c0_i32_1 = arith.constant 0 : i32
    return %c0_i32, %c0_i32_0 : i32, i32
  }
  func.func @transform_9(%arg0: i32) -> (i32, i32) {
    %c0_i32 = arith.constant 0 : i32
    %c0_i32_0 = arith.constant 0 : i32
    return %arg0, %c0_i32 : i32, i32
  }
}

</mosaic_0001>

<bundles_post_ra>
// kernel: tpu_custom_call.1
= control target key start
LH: loop header
LB: loop body
LE: loop exit
PB: predicated region body
PF: predicated region fallthrough
CT: control target
= control target key end

     0   :  { %14 = vsyncpa [#allocation3], 0  ;;  %s1034_s0 = inlined_call_operand.vmem [shape: f32[64,16], index: 0, kind: input, shape index: {}]   ;;  %s1035_s1 = inlined_call_operand.vmem [shape: f32[16,32], index: 1, kind: input, shape index: {}]   ;;  %s1036_s2 = inlined_call_operand.vmem [shape: f32[1,32], index: 2, kind: input, shape index: {}]   ;;  %s1037_s3 = inlined_call_operand.vmem [shape: f32[32,32], index: 3, kind: input, shape index: {}]   ;;  %s1038_s4 = inlined_call_operand.vmem [shape: f32[1,32], index: 4, kind: input, shape index: {}]   ;;  %s1039_s5 = inlined_call_operand.vmem [shape: f32[32,32], index: 5, kind: input, shape index: {}]   ;;  %s1040_s6 = inlined_call_operand.vmem [shape: f32[1,32], index: 6, kind: input, shape index: {}]   ;;  %s1041_s7 = inlined_call_operand.hbm [shape: f32[32,128], index: 7, kind: input, shape index: {}]   ;;  %s1042_s8 = inlined_call_operand.vmem [shape: f32[1,128], index: 8, kind: input, shape index: {}]   ;;  %s1043_s9 = inlined_call_operand.hbm [shape: f32[64,128], index: 9, kind: output, shape index: {}]  }
   0x1   :  { %15 = vsyncpa [#allocation4], 0  ;;  %s870_s30 = smov [#allocation2]  }
   0x2   :  { %s35_s10 = sshll.u32 %s870_s30, 4  ;;  %s36_s10 = int_to_ptr.vmem [resolvable:$true] %s35_s10 }
   0x3   :  { %s834_s11 = scalar_lea.vmem %s36_s10, 512  ;;  %p839_p1 = scmp.lt.s32.totalorder %s36_s10, %s36_s10 }
   0x4   :  { %p835_p0 = scmp.ne.s32.totalorder %s36_s10, %s834_s11  ;;  %p840_p2 = scmp.lt.s32.totalorder %s834_s11, %s834_s11 }
   0x6   :  { %p841_p3 = por %p840_p2, %p839_p1 }
   0x8   :  { %p842_p4 = pnand %p841_p3, %p835_p0 }
   0xa   :  { %845 = shalt.err (!%p842_p4)
}
   0xb   :  { %s871_s12 = smov 128   ;;  %s872_s13 = smov 8  }
   0xc   :  { %41 = dma.hbm_to_vmem [thread:$0]  %s1041_s7, 512, %s36_s10, [#allocation3], %s871_s12, %s871_s12, %s872_s13  }
   0xd   :  { %866 = dma.done.wait [#allocation3], 512  }
   0xe   :  { %867 = vsyncadd [#allocation3], 4294966784  ;;  %vm64_vm0 = vcmask 130048   ;;  %v56_v0 = vld [vmem:[%s1035_s1 + $0x8] sm:$0xff]  ;;  %v55_v1 = vld [vmem:[%s1035_s1] sm:$0xff]  ;;  %vm213_vm1 = vcmask 261120  }
   0xf   :  { %v47_v2 = vld [vmem:[%s1034_s0] sm:$0xff]  ;;  %746 = vmatprep.subr.mxu0 %v56_v0  ;;  %v48_v3 = vld [vmem:[%s1034_s0 + $0x8] sm:$0xff]  ;;  %v49_v4 = vld [vmem:[%s1034_s0 + $0x10] sm:$0xff]  ;;  %s873_s10 = smov [#allocation5]  }
  0x10   :  { %750 = vmatprep.mubr.msk.f32.mxu0 %vm64_vm0, %v47_v2  ;;  %747 = vmatpush3.msra.mxu0 %v56_v0  ;;  %v50_v5 = vld [vmem:[%s1034_s0 + $0x18] sm:$0xff]  ;;  %v51_v6 = vld [vmem:[%s1034_s0 + $0x20] sm:$0xff]  ;;  %v52_v7 = vld [vmem:[%s1034_s0 + $0x28] sm:$0xff] }
  0x11   :  { %748 = vmatprep.subr.mxu0 %v55_v1  ;;  %v53_v8 = vld [vmem:[%s1034_s0 + $0x30] sm:$0xff]  ;;  %v54_v9 = vld [vmem:[%s1034_s0 + $0x38] sm:$0xff]  ;;  %v203_v12 = vld [vmem:[%s1037_s3 + $0x8] sm:$0xff] }
  0x12   :  { %749 = vmatpush3.msra.mxu0 %v55_v1  ;;  %v205_v10 = vld [vmem:[%s1037_s3 + $0x18] sm:$0xff]  ;;  %v204_v11 = vld [vmem:[%s1037_s3 + $0x10] sm:$0xff]  ;;  %v202_v13 = vld [vmem:[%s1037_s3] sm:$0xff] }
  0x13   :  { %751 = vmatmul.mubr.msk.f32.vlgmr.msra.gmra.mxu0 %vm64_vm0, %v48_v3  ;;  %762 = vmatprep.subr.mxu1 %v205_v10  ;;  %v354_v14 = vld [vmem:[%s1039_s5 + $0x18] sm:$0xff]  ;;  %v353_v15 = vld [vmem:[%s1039_s5 + $0x10] sm:$0xff]  ;;  %v352_v16 = vld [vmem:[%s1039_s5 + $0x8] sm:$0xff] }
  0x14   :  { %753 = vmatprep.mubr.msk.f32.mxu0 %vm64_vm0, %v49_v4  ;;  %763 = vmatpush3.msra.mxu1 %v205_v10  ;;  %v664_v17 = vld [vmem:[%s1036_s2] ss:$0 sm:$0xff]  ;;  %v502_v43 = vld [vmem:[#allocation2 + $0x18] sm:$0xff]  ;;  %v501_v44 = vld [vmem:[#allocation2 + $0x10] sm:$0xff] }
  0x15   :  { %764 = vmatprep.subr.mxu1 %v204_v11  ;;  %782 = vmatprep.subr.mxu0 %v354_v14  ;;  %v351_v42 = vld [vmem:[%s1039_s5] sm:$0xff]  ;;  %v500_v45 = vld [vmem:[#allocation2 + $0x8] sm:$0xff] }
  0x16   :  { %765 = vmatpush3.msra.mxu1 %v204_v11  ;;  %783 = vmatpush3.msra.mxu0 %v354_v14  ;;  %v673_v46 = vld [vmem:[%s1038_s4] ss:$0 sm:$0xff] }
  0x17   :  { %754 = vmatmul.mubr.msk.f32.gmra.mxu0 %vm64_vm0, %v50_v5  ;;  %766 = vmatprep.subr.mxu1 %v203_v12 }
  0x18   :  { %756 = vmatprep.mubr.msk.f32.mxu0 %vm64_vm0, %v51_v6  ;;  %767 = vmatpush3.msra.mxu1 %v203_v12 }
  0x19   :  { %768 = vmatprep.subr.mxu1 %v202_v13  ;;  %784 = vmatprep.subr.mxu0 %v353_v15 }
  0x1a   :  { %769 = vmatpush3.msra.mxu1 %v202_v13  ;;  %785 = vmatpush3.msra.mxu0 %v353_v15 }
  0x1b   :  { %757 = vmatmul.mubr.msk.f32.gmra.mxu0 %vm64_vm0, %v52_v7  ;;  %786 = vmatprep.subr.mxu0 %v352_v16  ;;  %v499_v7 = vld [vmem:[#allocation2] sm:$0xff] }
  0x1c   :  { %759 = vmatprep.mubr.msk.f32.mxu0 %vm64_vm0, %v53_v8  ;;  %787 = vmatpush3.msra.mxu0 %v352_v16  ;;  %v682_v8 = vld [vmem:[%s1040_s6] ss:$0 sm:$0xff] }
  0x1d   :  { %788 = vmatprep.subr.mxu0 %v351_v42  ;;  %802 = vmatprep.subr.mxu1 %v502_v43 }
  0x1e   :  { %789 = vmatpush3.msra.mxu0 %v351_v42 }
  0x1f   :  { %760 = vmatmul.mubr.msk.f32.gmra.mxu0 %vm64_vm0, %v54_v9 }
  0xd3   :  { %v752_v18 = vpop.f32.mrf.mxu0 }
  0xd4   :  { %v161_v19 = vadd.f32 %v752_v18, %v664_v17 }
  0xd5   :  { %v155_v20 = vpop.f32.mrf.mxu0 }
  0xd6   :  { %v156_v21 = vadd.f32 %v664_v17, %v155_v20  ;;  %v195_v24 = vmax.f32 %v161_v19, 0.0 }
  0xd7   :  { %v755_v22 = vpop.f32.mrf.mxu0 }
  0xd8   :  { %v194_v23 = vmax.f32 %v156_v21, 0.0  ;;  %v171_v25 = vadd.f32 %v755_v22, %v664_v17 }
  0xd9   :  { %v165_v26 = vpop.f32.mrf.mxu0 }
  0xda   :  { %v166_v27 = vadd.f32 %v664_v17, %v165_v26  ;;  %770 = vmatprep.mubr.msk.f32.mxu1 %vm213_vm1, %v194_v23  ;;  %v197_v30 = vmax.f32 %v171_v25, 0.0 }
  0xdb   :  { %v758_v28 = vpop.f32.mrf.mxu0  ;;  %771 = vmatmul.mubr.msk.f32.vlgmr.msra.gmra.mxu1 %vm213_vm1, %v195_v24 }
  0xdc   :  { %v196_v29 = vmax.f32 %v166_v27, 0.0  ;;  %v181_v31 = vadd.f32 %v758_v28, %v664_v17  ;;  %803 = vmatpush3.msra.mxu1 %v502_v43 }
  0xdd   :  { %v175_v32 = vpop.f32.mrf.mxu0  ;;  %804 = vmatprep.subr.mxu1 %v501_v44 }
  0xde   :  { %v176_v33 = vadd.f32 %v664_v17, %v175_v32  ;;  %773 = vmatprep.mubr.msk.f32.mxu1 %vm213_vm1, %v196_v29  ;;  %v199_v36 = vmax.f32 %v181_v31, 0.0  ;;  %805 = vmatpush3.msra.mxu1 %v501_v44 }
  0xdf   :  { %v761_v34 = vpop.f32.mrf.mxu0  ;;  %774 = vmatmul.mubr.msk.f32.gmra.mxu1 %vm213_vm1, %v197_v30  ;;  %806 = vmatprep.subr.mxu1 %v500_v45 }
  0xe0   :  { %v198_v35 = vmax.f32 %v176_v33, 0.0  ;;  %v191_v37 = vadd.f32 %v761_v34, %v664_v17  ;;  %807 = vmatpush3.msra.mxu1 %v500_v45  ;;  %v691_v33 = vld [vmem:[%s1042_s8] ss:$0 sm:$0xff]  ;;  %s652_s8 = sshll.u32 %s873_s10, 4  ;;  %s653_s8 = int_to_ptr.vmem [resolvable:$true] %s652_s8 }
  0xe1   :  { %v185_v38 = vpop.f32.mrf.mxu0  ;;  %808 = vmatprep.subr.mxu1 %v499_v7  ;;  %s846_s11 = scalar_lea.vmem %s653_s8, 1024  ;;  %p851_p6 = scmp.lt.s32.totalorder %s653_s8, %s653_s8 }
  0xe2   :  { %v186_v39 = vadd.f32 %v664_v17, %v185_v38  ;;  %776 = vmatprep.mubr.msk.f32.mxu1 %vm213_vm1, %v198_v35  ;;  %v201_v41 = vmax.f32 %v191_v37, 0.0  ;;  %809 = vmatpush3.msra.mxu1 %v499_v7  ;;  %p847_p5 = scmp.ne.s32.totalorder %s653_s8, %s846_s11  ;;  %p852_p7 = scmp.lt.s32.totalorder %s846_s11, %s846_s11 }
  0xe3   :  { %777 = vmatmul.mubr.msk.f32.gmra.mxu1 %vm213_vm1, %v199_v36 }
  0xe4   :  { %v200_v40 = vmax.f32 %v186_v39, 0.0  ;;  %p853_p8 = por %p852_p7, %p851_p6 }
  0xe6   :  { %779 = vmatprep.mubr.msk.f32.mxu1 %vm213_vm1, %v200_v40  ;;  %p854_p9 = pnand %p853_p8, %p847_p5 }
  0xe7   :  { %780 = vmatmul.mubr.msk.f32.gmra.mxu1 %vm213_vm1, %v201_v41 }
 0x19b   :  { %v772_v47 = vpop.f32.mrf.mxu1 }
 0x19c   :  { %v310_v48 = vadd.f32 %v772_v47, %v673_v46 }
 0x19d   :  { %v304_v49 = vpop.f32.mrf.mxu1 }
 0x19e   :  { %v305_v50 = vadd.f32 %v673_v46, %v304_v49  ;;  %v344_v53 = vmax.f32 %v310_v48, 0.0 }
 0x19f   :  { %v775_v51 = vpop.f32.mrf.mxu1 }
 0x1a0   :  { %v343_v52 = vmax.f32 %v305_v50, 0.0  ;;  %v320_v54 = vadd.f32 %v775_v51, %v673_v46 }
 0x1a1   :  { %v314_v55 = vpop.f32.mrf.mxu1 }
 0x1a2   :  { %v315_v56 = vadd.f32 %v673_v46, %v314_v55  ;;  %790 = vmatprep.mubr.msk.f32.mxu0 %vm213_vm1, %v343_v52  ;;  %v346_v59 = vmax.f32 %v320_v54, 0.0 }
 0x1a3   :  { %v778_v57 = vpop.f32.mrf.mxu1  ;;  %791 = vmatmul.mubr.msk.f32.vlgmr.msra.gmra.mxu0 %vm213_vm1, %v344_v53 }
 0x1a4   :  { %v345_v58 = vmax.f32 %v315_v56, 0.0  ;;  %v330_v60 = vadd.f32 %v778_v57, %v673_v46 }
 0x1a5   :  { %v324_v61 = vpop.f32.mrf.mxu1 }
 0x1a6   :  { %v325_v62 = vadd.f32 %v673_v46, %v324_v61  ;;  %793 = vmatprep.mubr.msk.f32.mxu0 %vm213_vm1, %v345_v58  ;;  %v348_v1 = vmax.f32 %v330_v60, 0.0 }
 0x1a7   :  { %v781_v63 = vpop.f32.mrf.mxu1  ;;  %794 = vmatmul.mubr.msk.f32.gmra.mxu0 %vm213_vm1, %v346_v59 }
 0x1a8   :  { %v347_v0 = vmax.f32 %v325_v62, 0.0  ;;  %v340_v2 = vadd.f32 %v781_v63, %v673_v46 }
 0x1a9   :  { %v334_v3 = vpop.f32.mrf.mxu1 }
 0x1aa   :  { %v335_v4 = vadd.f32 %v673_v46, %v334_v3  ;;  %796 = vmatprep.mubr.msk.f32.mxu0 %vm213_vm1, %v347_v0  ;;  %v350_v6 = vmax.f32 %v340_v2, 0.0 }
 0x1ab   :  { %797 = vmatmul.mubr.msk.f32.gmra.mxu0 %vm213_vm1, %v348_v1 }
 0x1ac   :  { %v349_v5 = vmax.f32 %v335_v4, 0.0 }
 0x1ae   :  { %799 = vmatprep.mubr.msk.f32.mxu0 %vm213_vm1, %v349_v5 }
 0x1af   :  { %800 = vmatmul.mubr.msk.f32.gmra.mxu0 %vm213_vm1, %v350_v6 }
 0x263   :  { %v792_v9 = vpop.f32.mrf.mxu0 }
 0x264   :  { %v458_v10 = vadd.f32 %v792_v9, %v682_v8 }
 0x265   :  { %v452_v11 = vpop.f32.mrf.mxu0 }
 0x266   :  { %v453_v12 = vadd.f32 %v682_v8, %v452_v11  ;;  %v492_v15 = vmax.f32 %v458_v10, 0.0 }
 0x267   :  { %v795_v13 = vpop.f32.mrf.mxu0 }
 0x268   :  { %v491_v14 = vmax.f32 %v453_v12, 0.0  ;;  %v468_v16 = vadd.f32 %v795_v13, %v682_v8 }
 0x269   :  { %v462_v17 = vpop.f32.mrf.mxu0 }
 0x26a   :  { %v463_v18 = vadd.f32 %v682_v8, %v462_v17  ;;  %810 = vmatprep.mubr.msk.f32.mxu1 %vm213_vm1, %v491_v14  ;;  %v494_v21 = vmax.f32 %v468_v16, 0.0 }
 0x26b   :  { %v798_v19 = vpop.f32.mrf.mxu0  ;;  %811 = vmatmul.mubr.msk.f32.vlgmr.msra.gmra.mxu1 %vm213_vm1, %v492_v15 }
 0x26c   :  { %v493_v20 = vmax.f32 %v463_v18, 0.0  ;;  %v478_v22 = vadd.f32 %v798_v19, %v682_v8 }
 0x26d   :  { %v472_v23 = vpop.f32.mrf.mxu0 }
 0x26e   :  { %v473_v24 = vadd.f32 %v682_v8, %v472_v23  ;;  %813 = vmatprep.mubr.msk.f32.mxu1 %vm213_vm1, %v493_v20  ;;  %v496_v27 = vmax.f32 %v478_v22, 0.0 }
 0x26f   :  { %v801_v25 = vpop.f32.mrf.mxu0  ;;  %814 = vmatmul.mubr.msk.f32.gmra.mxu1 %vm213_vm1, %v494_v21 }
 0x270   :  { %v495_v26 = vmax.f32 %v473_v24, 0.0  ;;  %v488_v28 = vadd.f32 %v801_v25, %v682_v8 }
 0x271   :  { %v482_v29 = vpop.f32.mrf.mxu0 }
 0x272   :  { %v483_v30 = vadd.f32 %v682_v8, %v482_v29  ;;  %816 = vmatprep.mubr.msk.f32.mxu1 %vm213_vm1, %v495_v26  ;;  %v498_v32 = vmax.f32 %v488_v28, 0.0 }
 0x273   :  { %817 = vmatmul.mubr.msk.f32.gmra.mxu1 %vm213_vm1, %v496_v27 }
 0x274   :  { %v497_v31 = vmax.f32 %v483_v30, 0.0 }
 0x276   :  { %819 = vmatprep.mubr.msk.f32.mxu1 %vm213_vm1, %v497_v31 }
 0x277   :  { %820 = vmatmul.mubr.msk.f32.gmra.mxu1 %vm213_vm1, %v498_v32 }
 0x32b   :  { %v812_v34 = vpop.f32.mrf.mxu1 }
 0x32c   :  { %v606_v35 = vadd.f32 %v812_v34, %v691_v33 }
 0x32d   :  { %v600_v36 = vpop.f32.mrf.mxu1 }
 0x32e   :  { %640 = vst [vmem:[#allocation5 + $0x8] sm:$0xff] %v606_v35  ;;  %v601_v37 = vadd.f32 %v691_v33, %v600_v36 }
 0x32f   :  { %v815_v38 = vpop.f32.mrf.mxu1 }
 0x330   :  { %639 = vst [vmem:[#allocation5] sm:$0xff] %v601_v37  ;;  %v616_v39 = vadd.f32 %v815_v38, %v691_v33 }
 0x331   :  { %v610_v40 = vpop.f32.mrf.mxu1 }
 0x332   :  { %642 = vst [vmem:[#allocation5 + $0x18] sm:$0xff] %v616_v39  ;;  %v611_v41 = vadd.f32 %v691_v33, %v610_v40 }
 0x333   :  { %v818_v42 = vpop.f32.mrf.mxu1 }
 0x334   :  { %641 = vst [vmem:[#allocation5 + $0x10] sm:$0xff] %v611_v41  ;;  %v626_v43 = vadd.f32 %v818_v42, %v691_v33 }
 0x335   :  { %v620_v44 = vpop.f32.mrf.mxu1 }
 0x336   :  { %644 = vst [vmem:[#allocation5 + $0x28] sm:$0xff] %v626_v43  ;;  %v621_v45 = vadd.f32 %v691_v33, %v620_v44 }
 0x337   :  { %v821_v46 = vpop.f32.mrf.mxu1 }
 0x338   :  { %643 = vst [vmem:[#allocation5 + $0x20] sm:$0xff] %v621_v45  ;;  %v636_v47 = vadd.f32 %v821_v46, %v691_v33 }
 0x339   :  { %v630_v48 = vpop.f32.mrf.mxu1 }
 0x33a   :  { %646 = vst [vmem:[#allocation5 + $0x38] sm:$0xff] %v636_v47  ;;  %v631_v49 = vadd.f32 %v691_v33, %v630_v48 }
 0x33c   :  { %645 = vst [vmem:[#allocation5 + $0x30] sm:$0xff] %v631_v49 }
 0x33d   :  { %857 = shalt.err (!%p854_p9)
}
 0x33e   :  { %658 = dma.vmem_to_hbm [thread:$0]  %s653_s8, 1024, %s1043_s9, [#allocation4], %s871_s12, %s871_s12, %s872_s13  }
 0x33f   :  { %868 = dma.done.wait [#allocation4], 1024  }
 0x340   :  { %869 = vsyncadd [#allocation4], 4294966272 }
 0x341   :  { %662 = vsyncpa [#allocation3], 1 }
 0x342   :  { %663 = vsyncpa [#allocation4], 1 }

</bundles_post_ra>
